<compile_context>
chip_gen: v6e
topology: v6e:2x2x1
jax: 0.10.0
libtpu: 0.0.40
codegen_flags: <defaults>
</compile_context>

<pallas_src>
import jax
import jax.numpy as jnp
from jax.experimental import pallas as pl
from jax.experimental.pallas import tpu as pltpu


def _round_up(n: int, m: int) -> int:
    return ((n + m - 1) // m) * m


def mlp_kernel(x_ref, w1_ref, b1_ref, w2_ref, b2_ref, o_ref):
    # first_layer: x @ W1 (MXU, f32 accumulation) + bias, then ReLU (VPU, f32).
    h = jnp.dot(x_ref[...], w1_ref[...], preferred_element_type=jnp.float32)
    h = jnp.maximum(h + b1_ref[...], 0.0)
    # Single explicit cast only if the second-layer weights are narrower (bf16
    # path on v6e/v7x); no-op cast is avoided in the all-f32 configuration.
    if w2_ref.dtype != h.dtype:
        h = h.astype(w2_ref.dtype)
    # second_layer: h @ W2 (MXU, f32 accumulation) + bias.
    y = jnp.dot(h, w2_ref[...], preferred_element_type=jnp.float32)
    y = y + b2_ref[...]
    # Sigmoid (EUP exp + reciprocal), lane-dense 128-wide store.
    o_ref[...] = jax.nn.sigmoid(y).astype(o_ref.dtype)


def mlp_forward(x, w1, b1, w2, b2, *, tile_b=512):
    """x: [B, vec_dim]; w1: [vec_dim, hidden]; b1: [hidden] or [1, hidden];
    w2: [hidden, num_classes]; b2: [num_classes] or [1, num_classes]
    -> [B, num_classes] (f32)."""
    B, vec_dim = x.shape
    hidden = w1.shape[1]
    num_classes = w2.shape[1]

    # Pad feature dims to multiples of 128 for lane-dense VPU work and
    # unmasked output stores.  Zero-padded hidden units are killed by ReLU(0)
    # and zero w2 rows; padded class columns are sliced off below.
    hid_p = _round_up(hidden, 128)
    out_p = _round_up(num_classes, 128)

    w1p = jnp.zeros((vec_dim, hid_p), w1.dtype).at[:, :hidden].set(w1)
    b1p = jnp.zeros((1, hid_p), jnp.float32).at[:, :hidden].set(
        b1.reshape(1, -1).astype(jnp.float32))
    w2p = jnp.zeros((hid_p, out_p), w2.dtype).at[:hidden, :num_classes].set(w2)
    b2p = jnp.zeros((1, out_p), jnp.float32).at[:, :num_classes].set(
        b2.reshape(1, -1).astype(jnp.float32))

    # Keep MXU operand dtypes consistent if weights are bf16.
    if x.dtype != w1p.dtype:
        x = x.astype(w1p.dtype)

    # Batch tile: multiple of 8 sublanes, capped at tile_b (512-row f32 tiles
    # measured ~85% of HBM roofline).  Pad B up to a whole number of tiles.
    tb = min(tile_b, _round_up(B, 8))
    B_p = _round_up(B, tb)
    if B_p != B:
        x = jnp.zeros((B_p, vec_dim), x.dtype).at[:B].set(x)

    grid = (B_p // tb,)

    # VMEM budget (double-buffered x + out tiles, resident padded weights):
    #   2*2*tb*(vec_dim + out_p)*4 B + (vec_dim*hid_p + hid_p*out_p)*4 B
    # For tb=512, vec_dim=32: ~0.75 MiB -- comfortably under the 32 MiB scoped
    # default on all of v5e/v6e/v7x (and v7x's 64 MiB physical), so no
    # vmem_limit_bytes override is needed.
    out_padded = pl.pallas_call(
        mlp_kernel,
        out_shape=jax.ShapeDtypeStruct((B_p, out_p), jnp.float32),
        grid=grid,
        in_specs=[
            # x: streamed per batch tile.
            pl.BlockSpec((tb, vec_dim), lambda i: (i, 0)),
            # Weights / biases: constant index_map -> DMA'd once, stay resident.
            pl.BlockSpec((vec_dim, hid_p), lambda i: (0, 0)),
            pl.BlockSpec((1, hid_p), lambda i: (0, 0)),
            pl.BlockSpec((hid_p, out_p), lambda i: (0, 0)),
            pl.BlockSpec((1, out_p), lambda i: (0, 0)),
        ],
        out_specs=pl.BlockSpec((tb, out_p), lambda i: (i, 0)),
        compiler_params=pltpu.CompilerParams(
            # Batch axis is embarrassingly parallel -> shards across v7x's 2 TCs.
            dimension_semantics=("parallel",),
        ),
    )(x, w1p, b1p, w2p, b2p)

    # Drop batch padding and the zero-padded class columns.
    return out_padded[:B, :num_classes]


def init_params(key, vec_dim, num_classes, hidden_dim=100, dtype=jnp.float32):
    """Deterministic init mimicking nn.Linear's uniform(-1/sqrt(fan_in), +).
    Weights are stored [in_dim, out_dim] (transposed vs. PyTorch)."""
    k1, k2, k3, k4 = jax.random.split(key, 4)
    bound1 = 1.0 / jnp.sqrt(vec_dim)
    bound2 = 1.0 / jnp.sqrt(hidden_dim)
    w1 = jax.random.uniform(k1, (vec_dim, hidden_dim), jnp.float32,
                            -bound1, bound1).astype(dtype)
    b1 = jax.random.uniform(k2, (1, hidden_dim), jnp.float32, -bound1, bound1)
    w2 = jax.random.uniform(k3, (hidden_dim, num_classes), jnp.float32,
                            -bound2, bound2).astype(dtype)
    b2 = jax.random.uniform(k4, (1, num_classes), jnp.float32, -bound2, bound2)
    return w1, b1, w2, b2


if __name__ == "__main__":
    key = jax.random.PRNGKey(0)
    B, vec_dim, num_classes, hidden_dim = 8, 32, 10, 100

    kx, kp = jax.random.split(key)
    x = jax.random.normal(kx, (B, vec_dim), jnp.float32)
    w1, b1, w2, b2 = init_params(kp, vec_dim, num_classes, hidden_dim)

    out = jax.block_until_ready(mlp_forward(x, w1, b1, w2, b2))

    # Reference check in plain JAX (same math as the PyTorch module).
    ref = jax.nn.sigmoid(jnp.maximum(x @ w1 + b1, 0.0) @ w2 + b2)
    assert out.shape == (B, num_classes)
    assert jnp.allclose(out, ref, atol=1e-5, rtol=1e-5)

    print("KERNEL_OK")
</pallas_src>

<mosaic_0001>
module attributes {stable_mosaic.version = 11 : i64} {
  func.func @mlp_kernel(%arg0: i32, %arg1: memref<8x32xf32, #tpu.memory_space<vmem>>, %arg2: memref<32x128xf32, #tpu.memory_space<vmem>>, %arg3: memref<1x128xf32, #tpu.memory_space<vmem>>, %arg4: memref<128x128xf32, #tpu.memory_space<vmem>>, %arg5: memref<1x128xf32, #tpu.memory_space<vmem>>, %arg6: memref<8x128xf32, #tpu.memory_space<vmem>>) attributes {dimension_semantics = [#tpu.dimension_semantics<parallel>], iteration_bounds = array<i64: 1>, scalar_prefetch = 0 : i64, scratch_operands = 0 : i64, tpu.core_type = #tpu.core_type<tc>, window_params = [{transform_indices = @transform_0, window_bounds = array<i64: 8, 32>}, {pipeline_mode = #tpu.pipeline_mode<synchronous>, transform_indices = @transform_1, window_bounds = array<i64: 32, 128>}, {pipeline_mode = #tpu.pipeline_mode<synchronous>, transform_indices = @transform_2, window_bounds = array<i64: 1, 128>}, {pipeline_mode = #tpu.pipeline_mode<synchronous>, transform_indices = @transform_3, window_bounds = array<i64: 128, 128>}, {pipeline_mode = #tpu.pipeline_mode<synchronous>, transform_indices = @transform_4, window_bounds = array<i64: 1, 128>}, {transform_indices = @transform_5, window_bounds = array<i64: 8, 128>}]} {
    %c0 = arith.constant 0 : index
    %c0_0 = arith.constant 0 : index
    %0 = vector.load %arg1[%c0, %c0_0] : memref<8x32xf32, #tpu.memory_space<vmem>>, vector<8x32xf32>
    %c0_1 = arith.constant 0 : index
    %c0_2 = arith.constant 0 : index
    %1 = vector.load %arg2[%c0_1, %c0_2] : memref<32x128xf32, #tpu.memory_space<vmem>>, vector<32x128xf32>
    %cst = arith.constant dense<0.000000e+00> : vector<8x128xf32>
    %2 = tpu.matmul %0, %1, %cst {dimension_numbers = #tpu.dot_dimension_numbers<[1], [0], [0], [1], [0, 0, 1, 1], [], []>} : vector<8x32xf32>, vector<32x128xf32>, vector<8x128xf32> -> vector<8x128xf32>
    %c0_3 = arith.constant 0 : index
    %c0_4 = arith.constant 0 : index
    %3 = vector.load %arg3[%c0_3, %c0_4] : memref<1x128xf32, #tpu.memory_space<vmem>>, vector<1x128xf32>
    %4 = vector.broadcast %3 : vector<1x128xf32> to vector<8x128xf32>
    %5 = arith.addf %2, %4 : vector<8x128xf32>
    %cst_5 = arith.constant 0.000000e+00 : f32
    %6 = vector.broadcast %cst_5 : f32 to vector<8x128xf32>
    %7 = arith.maximumf %5, %6 : vector<8x128xf32>
    %c0_6 = arith.constant 0 : index
    %c0_7 = arith.constant 0 : index
    %8 = vector.load %arg4[%c0_6, %c0_7] : memref<128x128xf32, #tpu.memory_space<vmem>>, vector<128x128xf32>
    %cst_8 = arith.constant dense<0.000000e+00> : vector<8x128xf32>
    %9 = tpu.matmul %7, %8, %cst_8 {dimension_numbers = #tpu.dot_dimension_numbers<[1], [0], [0], [1], [0, 0, 1, 1], [], []>} : vector<8x128xf32>, vector<128x128xf32>, vector<8x128xf32> -> vector<8x128xf32>
    %c0_9 = arith.constant 0 : index
    %c0_10 = arith.constant 0 : index
    %10 = vector.load %arg5[%c0_9, %c0_10] : memref<1x128xf32, #tpu.memory_space<vmem>>, vector<1x128xf32>
    %11 = vector.broadcast %10 : vector<1x128xf32> to vector<8x128xf32>
    %12 = arith.addf %9, %11 : vector<8x128xf32>
    %13 = arith.negf %12 : vector<8x128xf32>
    %14 = math.exp %13 : vector<8x128xf32>
    %cst_11 = arith.constant 1.000000e+00 : f32
    %15 = vector.broadcast %cst_11 : f32 to vector<8x128xf32>
    %16 = arith.addf %15, %14 : vector<8x128xf32>
    %17 = arith.divf %15, %16 : vector<8x128xf32>
    %c0_12 = arith.constant 0 : index
    %c0_13 = arith.constant 0 : index
    %18 = vector.load %arg6[%c0_12, %c0_13] : memref<8x128xf32, #tpu.memory_space<vmem>>, vector<8x128xf32>
    tpu.vector_store %arg6[%c0_12, %c0_13], %17 {strides = array<i32>} : memref<8x128xf32, #tpu.memory_space<vmem>>, vector<8x128xf32>,
    return
  }
  func.func @transform_0(%arg0: i32) -> (i32, i32) {
    %c0_i32 = arith.constant 0 : i32
    %c0_i32_0 = arith.constant 0 : i32
    return %arg0, %c0_i32 : i32, i32
  }
  func.func @transform_1(%arg0: i32) -> (i32, i32) {
    %c0_i32 = arith.constant 0 : i32
    %c0_i32_0 = arith.constant 0 : i32
    %c0_i32_1 = arith.constant 0 : i32
    return %c0_i32, %c0_i32_0 : i32, i32
  }
  func.func @transform_2(%arg0: i32) -> (i32, i32) {
    %c0_i32 = arith.constant 0 : i32
    %c0_i32_0 = arith.constant 0 : i32
    %c0_i32_1 = arith.constant 0 : i32
    return %c0_i32, %c0_i32_0 : i32, i32
  }
  func.func @transform_3(%arg0: i32) -> (i32, i32) {
    %c0_i32 = arith.constant 0 : i32
    %c0_i32_0 = arith.constant 0 : i32
    %c0_i32_1 = arith.constant 0 : i32
    return %c0_i32, %c0_i32_0 : i32, i32
  }
  func.func @transform_4(%arg0: i32) -> (i32, i32) {
    %c0_i32 = arith.constant 0 : i32
    %c0_i32_0 = arith.constant 0 : i32
    %c0_i32_1 = arith.constant 0 : i32
    return %c0_i32, %c0_i32_0 : i32, i32
  }
  func.func @transform_5(%arg0: i32) -> (i32, i32) {
    %c0_i32 = arith.constant 0 : i32
    %c0_i32_0 = arith.constant 0 : i32
    return %arg0, %c0_i32 : i32, i32
  }
}

</mosaic_0001>

<bundles_post_ra>
// kernel: tpu_custom_call.1
= control target key start
LH: loop header
LB: loop body
LE: loop exit
PB: predicated region body
PF: predicated region fallthrough
CT: control target
= control target key end

     0   :  { %10 = vsyncpa [#allocation3], 0  ;;  %s511_s0 = inlined_call_operand.hbm [shape: f32[8,32], index: 0, kind: input, shape index: {}]   ;;  %s512_s1 = inlined_call_operand.hbm [shape: f32[32,128], index: 1, kind: input, shape index: {}]   ;;  %s513_s2 = inlined_call_operand.vmem [shape: f32[1,128], index: 2, kind: input, shape index: {}]   ;;  %s514_s3 = inlined_call_operand.hbm [shape: f32[128,128], index: 3, kind: input, shape index: {}]   ;;  %s515_s4 = inlined_call_operand.vmem [shape: f32[1,128], index: 4, kind: input, shape index: {}]   ;;  %s516_s5 = inlined_call_operand.hbm [shape: f32[8,128], index: 5, kind: output, shape index: {}]  }
   0x1   :  { %11 = vsyncpa [#allocation6], 0 }
   0x2   :  { %12 = vsyncpa [#allocation4], 0  ;;  %s433_s18 = smov [#allocation5]  }
   0x3   :  { %s28_s19 = sshll.u32 %s433_s18, 4  ;;  %s29_s19 = int_to_ptr.vmem [resolvable:$true] %s28_s19 }
   0x4   :  { %s355_s20 = scalar_lea.vmem %s29_s19, 512  ;;  %p360_p1 = scmp.lt.s32.totalorder %s29_s19, %s29_s19 }
   0x5   :  { %p356_p0 = scmp.ne.s32.totalorder %s29_s19, %s355_s20  ;;  %p361_p2 = scmp.lt.s32.totalorder %s355_s20, %s355_s20 }
   0x7   :  { %p362_p3 = por %p361_p2, %p360_p1 }
   0x9   :  { %p363_p4 = pnand %p362_p3, %p356_p0 }
   0xb   :  { %366 = shalt.err (!%p363_p4)
}
   0xc   :  { %s434_s21 = smov 128   ;;  %s435_s22 = smov 8  }
   0xd   :  { %34 = dma.hbm_to_vmem [thread:$0]  %s512_s1, 512, %s29_s19, [#allocation6], %s434_s21, %s434_s21, %s435_s22  }
   0xe   :  { %s436_s25 = smov [#allocation2]   ;;  %s437_s27 = smov [#allocation7]  }
   0xf   :  { %s19_s26 = sshll.u32 %s436_s25, 4  ;;  %s42_s28 = sshll.u32 %s437_s27, 4  ;;  %s20_s26 = int_to_ptr.vmem [resolvable:$true] %s19_s26  ;;  %s43_s28 = int_to_ptr.vmem [resolvable:$true] %s42_s28 }
  0x10   :  { %s375_s29 = scalar_lea.vmem %s20_s26, 128  ;;  %p380_p6 = scmp.lt.s32.totalorder %s20_s26, %s20_s26 }
  0x11   :  { %p376_p5 = scmp.ne.s32.totalorder %s20_s26, %s375_s29  ;;  %p381_p7 = scmp.lt.s32.totalorder %s375_s29, %s375_s29 }
  0x13   :  { %p382_p8 = por %p381_p7, %p380_p6 }
  0x15   :  { %p383_p9 = pnand %p382_p8, %p376_p5 }
  0x17   :  { %386 = shalt.err (!%p383_p9)
}
  0x18   :  { %22 = dma.hbm_to_vmem [thread:$0]  %s511_s0, 128, %s20_s26, [#allocation3]  }
  0x19   :  { %s395_s7 = scalar_lea.vmem %s43_s28, 2048  ;;  %p400_p11 = scmp.lt.s32.totalorder %s43_s28, %s43_s28 }
  0x1a   :  { %p396_p10 = scmp.ne.s32.totalorder %s43_s28, %s395_s7  ;;  %p401_p12 = scmp.lt.s32.totalorder %s395_s7, %s395_s7 }
  0x1c   :  { %p402_p13 = por %p401_p12, %p400_p11 }
  0x1e   :  { %p403_p0 = pnand %p402_p13, %p396_p10 }
  0x20   :  { %406 = shalt.err (!%p403_p0)
}
  0x21   :  { %48 = dma.hbm_to_vmem [thread:$0]  %s514_s3, 2048, %s43_s28, [#allocation6], %s434_s21, %s434_s21, %s435_s22  }
  0x22   :  { %427 = dma.done.wait [#allocation3], 128  }
  0x23   :  { %428 = vsyncadd [#allocation3], 4294967168 }
  0x24   :  { %429 = dma.done.wait [#allocation6], 2560  }
  0x25   :  { %430 = vsyncadd [#allocation6], 4294964736  ;;  %v438_v0 = vmov 0.0   ;;  %vm439_vm0 = vmmov 0   ;;  %v64_v1 = vld [vmem:[#allocation5 + $0x18] sm:$0xff]  ;;  %v63_v2 = vld [vmem:[#allocation5 + $0x10] sm:$0xff] }
  0x26   :  { %289 = vmatprep.subr.mxu0 %v438_v0  ;;  %297 = vmatprep.mubr.msk.f32.mxu0 %vm439_vm0, %v438_v0  ;;  %v162_v3 = vld [vmem:[#allocation7 + $0x78] sm:$0xff]  ;;  %v62_v4 = vld [vmem:[#allocation5 + $0x8] sm:$0xff]  ;;  %v161_v5 = vld [vmem:[#allocation7 + $0x70] sm:$0xff]  ;;  %vm72_vm1 = vcmask 261120   ;;  %s440_s11 = smov [#allocation8]  }
  0x27   :  { %300 = vmatprep.subr.mxu1 %v438_v0  ;;  %332 = vmatprep.mubr.msk.f32.mxu1 %vm439_vm0, %v438_v0  ;;  %v160_v6 = vld [vmem:[#allocation7 + $0x68] sm:$0xff]  ;;  %v61_v7 = vld [vmem:[#allocation5] sm:$0xff]  ;;  %v60_v8 = vld [vmem:[#allocation2] sm:$0xff]  ;;  %s253_s12 = sshll.u32 %s440_s11, 4  ;;  %s254_s12 = int_to_ptr.vmem [resolvable:$true] %s253_s12 }
  0x28   :  { %290 = vmatpush3.msra.mxu0 %v64_v1  ;;  %301 = vmatpush3.msra.mxu1 %v162_v3  ;;  %v159_v9 = vld [vmem:[#allocation7 + $0x60] sm:$0xff]  ;;  %v158_v10 = vld [vmem:[#allocation7 + $0x58] sm:$0xff]  ;;  %v157_v11 = vld [vmem:[#allocation7 + $0x50] sm:$0xff]  ;;  %p412_p2 = scmp.lt.s32.totalorder %s254_s12, %s254_s12 }
  0x29   :  { %291 = vmatprep.subr.mxu0 %v438_v0  ;;  %302 = vmatprep.subr.mxu1 %v438_v0  ;;  %v156_v12 = vld [vmem:[#allocation7 + $0x48] sm:$0xff]  ;;  %v155_v13 = vld [vmem:[#allocation7 + $0x40] sm:$0xff]  ;;  %v154_v14 = vld [vmem:[#allocation7 + $0x38] sm:$0xff] }
  0x2a   :  { %292 = vmatpush3.msra.mxu0 %v63_v2  ;;  %303 = vmatpush3.msra.mxu1 %v161_v5  ;;  %v153_v15 = vld [vmem:[#allocation7 + $0x30] sm:$0xff]  ;;  %v152_v16 = vld [vmem:[#allocation7 + $0x28] sm:$0xff]  ;;  %v151_v17 = vld [vmem:[#allocation7 + $0x20] sm:$0xff] }
  0x2b   :  { %293 = vmatprep.subr.mxu0 %v438_v0  ;;  %304 = vmatprep.subr.mxu1 %v438_v0  ;;  %v150_v18 = vld [vmem:[#allocation7 + $0x18] sm:$0xff]  ;;  %v149_v19 = vld [vmem:[#allocation7 + $0x10] sm:$0xff]  ;;  %v148_v20 = vld [vmem:[#allocation7 + $0x8] sm:$0xff] }
  0x2c   :  { %294 = vmatpush3.msra.mxu0 %v62_v4  ;;  %305 = vmatpush3.msra.mxu1 %v160_v6  ;;  %v147_v21 = vld [vmem:[#allocation7] sm:$0xff]  ;;  %v263_v22 = vld [vmem:[%s513_s2] ss:$0 sm:$0xff]  ;;  %s407_s2 = scalar_lea.vmem %s254_s12, 128 }
  0x2d   :  { %295 = vmatprep.subr.mxu0 %v438_v0  ;;  %306 = vmatprep.subr.mxu1 %v438_v0  ;;  %v265_v27 = vld [vmem:[%s515_s4] ss:$0 sm:$0xff]  ;;  %p408_p1 = scmp.ne.s32.totalorder %s254_s12, %s407_s2  ;;  %p413_p3 = scmp.lt.s32.totalorder %s407_s2, %s407_s2 }
  0x2e   :  { %296 = vmatpush3.msra.mxu0 %v61_v7  ;;  %307 = vmatpush3.msra.mxu1 %v159_v9 }
  0x2f   :  { %298 = vmatmul.mubr.msk.f32.vlgmr.msra.gmra.mxu0 %vm72_vm1, %v60_v8  ;;  %308 = vmatprep.subr.mxu1 %v438_v0  ;;  %p414_p4 = por %p413_p3, %p412_p2 }
  0x30   :  { %309 = vmatpush3.msra.mxu1 %v158_v10 }
  0x31   :  { %310 = vmatprep.subr.mxu1 %v438_v0  ;;  %p415_p5 = pnand %p414_p4, %p408_p1 }
  0x32   :  { %311 = vmatpush3.msra.mxu1 %v157_v11 }
  0x33   :  { %312 = vmatprep.subr.mxu1 %v438_v0 }
  0x34   :  { %313 = vmatpush3.msra.mxu1 %v156_v12 }
  0x35   :  { %314 = vmatprep.subr.mxu1 %v438_v0 }
  0x36   :  { %315 = vmatpush3.msra.mxu1 %v155_v13 }
  0x37   :  { %316 = vmatprep.subr.mxu1 %v438_v0 }
  0x38   :  { %317 = vmatpush3.msra.mxu1 %v154_v14 }
  0x39   :  { %318 = vmatprep.subr.mxu1 %v438_v0 }
  0x3a   :  { %319 = vmatpush3.msra.mxu1 %v153_v15 }
  0x3b   :  { %320 = vmatprep.subr.mxu1 %v438_v0 }
  0x3c   :  { %321 = vmatpush3.msra.mxu1 %v152_v16 }
  0x3d   :  { %322 = vmatprep.subr.mxu1 %v438_v0 }
  0x3e   :  { %323 = vmatpush3.msra.mxu1 %v151_v17 }
  0x3f   :  { %324 = vmatprep.subr.mxu1 %v438_v0 }
  0x40   :  { %325 = vmatpush3.msra.mxu1 %v150_v18 }
  0x41   :  { %326 = vmatprep.subr.mxu1 %v438_v0 }
  0x42   :  { %327 = vmatpush3.msra.mxu1 %v149_v19 }
  0x43   :  { %328 = vmatprep.subr.mxu1 %v438_v0 }
  0x44   :  { %329 = vmatpush3.msra.mxu1 %v148_v20 }
  0x45   :  { %330 = vmatprep.subr.mxu1 %v438_v0 }
  0x46   :  { %331 = vmatpush3.msra.mxu1 %v147_v21 }
  0xef   :  { %v142_v23 = vpop.f32.mrf.mxu0 }
  0xf0   :  { %v143_v24 = vadd.f32 %v263_v22, %v142_v23 }
  0xf1   :  { %v299_v25 = vpop.f32.mrf.mxu0 }
  0xf2   :  { %v146_v26 = vmax.f32 %v143_v24, 0.0 }
  0xf4   :  { %333 = vmatmul.mubr.f32.vlgmr.msra.gmra.mxu1 %v146_v26 }
 0x1b4   :  { %v236_v28 = vpop.f32.mrf.mxu1 }
 0x1b5   :  { %v237_v29 = vadd.f32 %v265_v27, %v236_v28 }
 0x1b6   :  { %v334_v30 = vpop.f32.mrf.mxu1 }
 0x1b7   :  { %v266_v31 = vmul.f32 -1.442695, %v237_v29 }
 0x1b9   :  { %343 = vpow2.f32 %v266_v31 }
 0x1c6   :  { %v344_v32 = vpop.eup %343 }
 0x1c7   :  { %v243_v33 = vadd.f32 1.0, %v344_v32 }
 0x1c9   :  { %345 = vrcp.f32 %v243_v33 }
 0x1d6   :  { %v346_v34 = vpop.eup %345 }
 0x1d7   :  { %246 = vst [vmem:[#allocation8] sm:$0xff] %v346_v34 }
 0x1d8   :  { %418 = shalt.err (!%p415_p5)
}
 0x1d9   :  { %256 = dma.vmem_to_hbm [thread:$0]  %s254_s12, 128, %s516_s5, [#allocation4]  }
 0x1da   :  { %431 = dma.done.wait [#allocation4], 128  }
 0x1db   :  { %432 = vsyncadd [#allocation4], 4294967168 }
 0x1dc   :  { %260 = vsyncpa [#allocation3], 1 }
 0x1dd   :  { %261 = vsyncpa [#allocation6], 1 }
 0x1de   :  { %262 = vsyncpa [#allocation4], 1 }

</bundles_post_ra>
